<compile_context>
chip_gen: v7x
topology: tpu7x:2x2x1
jax: 0.10.0
libtpu: 0.0.40
codegen_flags: <defaults>
</compile_context>

<pallas_src>
import jax
import jax.numpy as jnp
from jax.experimental import pallas as pl
from jax.experimental.pallas import tpu as pltpu


# --------------------------------------------------------------------------- #
# Helpers
# --------------------------------------------------------------------------- #
def _round_up(x, m):
    return (x + m - 1) // m * m


def _vmem_info():
    """Generation-aware (budget, capacity) in bytes for tile sizing.

    v5e/v6e: 128 MiB physical -> ~96 MiB budget; v7x: 64 MiB -> ~48 MiB budget.
    Conservative 64 MiB capacity fallback if the query is unavailable.
    """
    try:
        cap = int(getattr(pltpu.get_tpu_info(), "vmem_capacity_bytes"))
    except Exception:
        cap = 64 * 1024 * 1024
    budget = min((cap * 3) // 4, 100 * 1024 * 1024)
    return budget, cap


def _pick_pixel_tile(np_pixels, per_pixel_bytes, fixed_bytes, budget, max_t=8192):
    """Largest multiple of 128 dividing NP that fits the VMEM budget.

    Falls back to the smallest legal 128-multiple divisor, or to the full
    extent (legal BlockSpec) for ragged toy maps with no 128-multiple divisor.
    """
    cands = [t for t in range(128, min(np_pixels, max_t) + 1, 128)
             if np_pixels % t == 0]
    if not cands:
        return np_pixels
    for t in sorted(cands, reverse=True):
        if fixed_bytes + t * per_pixel_bytes <= budget:
            return t
    return cands[0]


# --------------------------------------------------------------------------- #
# Kernel
# --------------------------------------------------------------------------- #
def _make_detect_kernel(emit_logits):
    def kernel(x_ref, w_ref, g_ref, cst_ref, *out_refs):
        if emit_logits:
            logits_ref, y_ref = out_refs
        else:
            (y_ref,) = out_refs

        # Packed per-output-row constants, shape (row_block, 8):
        #   col 0: conv bias
        #   col 1: A     linear scale     (2*stride on xy rows, 1 elsewhere)
        #   col 2: C     wh coefficient   (4*anchor*stride on wh rows, 0 else)
        #   col 3: M     is-wh mask
        #   col 4: OFFX  stride on the x row, else 0
        #   col 5: OFFY  stride on the y row, else 0
        #   col 6: OFFC  -0.5*stride on xy rows, else 0
        cst = cst_ref[...]
        bias = cst[:, 0:1]
        a = cst[:, 1:2]
        c = cst[:, 2:3]
        m = cst[:, 3:4]
        offx = cst[:, 4:5]
        offy = cst[:, 5:6]
        offc = cst[:, 6:7]

        # 1x1 conv == (rows, cin) @ (cin, T) on the MXU; pixels on the lane axis.
        logits = jnp.dot(w_ref[...], x_ref[...],
                         preferred_element_type=jnp.float32) + bias
        if emit_logits:
            logits_ref[...] = logits.astype(logits_ref.dtype)

        # sigmoid(x) = 0.5*tanh(0.5*x) + 0.5  -> single EUP op, no VALU divide.
        s = 0.5 * jnp.tanh(0.5 * logits) + 0.5

        # xy grid offsets from the compact (2, T) table (row 0 = gx, row 1 = gy).
        g = g_ref[...]
        off = offx * g[0:1, :] + offy * g[1:2, :] + offc

        # Decode (all three cases with one select + one FMA-shaped expression):
        #   xy      : 2*stride*s + (g - 0.5)*stride
        #   wh      : 4*anchor*stride*s^2
        #   conf/cls: s
        t = jnp.where(m > 0.5, c * s, a)
        y_ref[...] = (t * s + off).astype(y_ref.dtype)

    return kernel


# --------------------------------------------------------------------------- #
# One detection level
# --------------------------------------------------------------------------- #
def detect_layer(x_nchw, weight, bias, anchors_i, stride_i, nc, *,
                 compute_dtype=jnp.float32,
                 logits_dtype=jnp.float32,
                 y_dtype=jnp.float32,
                 emit_logits=True):
    """One detection level.

    Returns (x_out (bs,na,ny,nx,no) or None, z (bs,na*ny*nx,no)).
    bf16 `compute_dtype` is worthwhile on all generations (including v5e: its
    HBM is the slowest and its MXU is bf16-native); decode stays in f32.
    """
    bs, cin, ny, nx = x_nchw.shape
    na = anchors_i.shape[0]
    no = nc + 5
    ncols = na * no
    NP = ny * nx

    # ---- operand prep: transpose-free; casts skipped when dtypes match ------
    xr = x_nchw.reshape(bs, cin, NP)          # pure reshape of NCHW, no transpose
    if xr.dtype != compute_dtype:
        # TODO(synk): have the preceding conv emit `compute_dtype` directly so
        # this full-activation cast (an extra HBM round trip) disappears.
        xr = xr.astype(compute_dtype)
    w = weight.reshape(ncols, cin)
    if w.dtype != compute_dtype:
        w = w.astype(compute_dtype)

    # ---- MXU-alignment padding (no-op at toy shapes) -------------------------
    cin_p = _round_up(cin, 128) if cin >= 128 else cin
    ncols_p = _round_up(ncols, 8)
    if cin_p != cin:
        # TODO(synk): pad channels upstream (in the producing conv) to avoid
        # this extra HBM pass over the activations.
        xr = jnp.pad(xr, ((0, 0), (0, cin_p - cin), (0, 0)))
        w = jnp.pad(w, ((0, 0), (0, cin_p - cin)))
    if ncols_p != ncols:
        w = jnp.pad(w, ((0, ncols_p - ncols), (0, 0)))

    # ---- packed per-output-row decode constants (ncols_p, 8) ----------------
    r = jnp.arange(ncols)
    c_idx = r % no
    is_xy = c_idx < 2
    is_wh = (c_idx >= 2) & (c_idx < 4)
    A = jnp.where(is_xy, 2.0 * stride_i, 1.0)
    anc = anchors_i[r // no, jnp.clip(c_idx - 2, 0, 1)]
    C = jnp.where(is_wh, 4.0 * anc * stride_i, 0.0)
    M = is_wh.astype(jnp.float32)
    OFFX = jnp.where(c_idx == 0, stride_i, 0.0)
    OFFY = jnp.where(c_idx == 1, stride_i, 0.0)
    OFFC = jnp.where(is_xy, -0.5 * stride_i, 0.0)
    B = bias.reshape(ncols).astype(jnp.float32)
    cst = jnp.stack(
        [B, A, C, M, OFFX, OFFY, OFFC, jnp.zeros((ncols,), jnp.float32)],
        axis=1).astype(jnp.float32)                                 # (ncols, 8)
    if ncols_p != ncols:
        pad_row = jnp.tile(
            jnp.array([[0., 1., 0., 0., 0., 0., 0., 0.]], jnp.float32),
            (ncols_p - ncols, 1))
        cst = jnp.concatenate([cst, pad_row], axis=0)

    # ---- compact grid-coordinate table (2, NP), shared across the batch -----
    yv, xv = jnp.meshgrid(jnp.arange(ny), jnp.arange(nx), indexing="ij")
    gxy = jnp.stack([xv.reshape(NP), yv.reshape(NP)], axis=0).astype(jnp.float32)

    # ---- tile sizing from a generation-aware VMEM budget ---------------------
    budget, vmem_cap = _vmem_info()
    in_b = jnp.dtype(compute_dtype).itemsize
    out_b = (jnp.dtype(logits_dtype).itemsize if emit_logits else 0) \
        + jnp.dtype(y_dtype).itemsize
    # double-buffered X, g, outputs (per pixel) + resident W, cst (fixed).
    per_pix = 2 * cin_p * in_b + 2 * ncols_p * out_b + 2 * 2 * 4
    fixed = 2 * ncols_p * cin_p * in_b + 2 * ncols_p * 8 * 4
    T = _pick_pixel_tile(NP, per_pix, fixed, budget)

    # ---- guarantee >= 2 grid steps so both v7x TensorCores get work ----------
    row_block = ncols_p
    if bs * (NP // T) < 2:
        smaller = [t for t in range(128, T, 128)
                   if NP % t == 0 and NP // t >= 2]
        if smaller:
            T = max(smaller)
        elif ncols_p % 16 == 0:
            row_block = ncols_p // 2
        elif ncols_p >= 16:
            row_block = 8
    n_row_blocks = ncols_p // row_block

    footprint = fixed + T * per_pix
    vmem_limit = int(min(max(budget, footprint + (4 << 20)),
                         (vmem_cap * 9) // 10))

    grid = (bs, n_row_blocks, NP // T)

    in_specs = [
        pl.BlockSpec((pl.Squeezed(), cin_p, T), lambda b, rr, j: (b, 0, j)),  # X
        pl.BlockSpec((row_block, cin_p), lambda b, rr, j: (rr, 0)),           # W
        pl.BlockSpec((2, T), lambda b, rr, j: (0, j)),                        # gx/gy
        pl.BlockSpec((row_block, 8), lambda b, rr, j: (rr, 0)),               # consts
    ]
    out_shapes = []
    out_specs = []
    if emit_logits:
        out_shapes.append(jax.ShapeDtypeStruct((bs, ncols_p, NP), logits_dtype))
        out_specs.append(pl.BlockSpec((pl.Squeezed(), row_block, T),
                                      lambda b, rr, j: (b, rr, j)))
    out_shapes.append(jax.ShapeDtypeStruct((bs, ncols_p, NP), y_dtype))
    out_specs.append(pl.BlockSpec((pl.Squeezed(), row_block, T),
                                  lambda b, rr, j: (b, rr, j)))

    outs = pl.pallas_call(
        _make_detect_kernel(emit_logits),
        out_shape=tuple(out_shapes),
        grid_spec=pltpu.PrefetchScalarGridSpec(
            num_scalar_prefetch=0,
            grid=grid,
            in_specs=in_specs,
            out_specs=out_specs,
        ),
        compiler_params=pltpu.CompilerParams(
            dimension_semantics=("parallel", "parallel", "parallel"),
            vmem_limit_bytes=vmem_limit),
    )(xr, w, gxy, cst)

    if emit_logits:
        logits_p, y_p = outs
    else:
        (y_p,) = outs
        logits_p = None

    if ncols_p != ncols:                       # slice off alignment padding
        y_p = y_p[:, :ncols, :]
        if logits_p is not None:
            logits_p = logits_p[:, :ncols, :]

    # Back to the PyTorch conventions (same permute the PyTorch module performs).
    z = y_p.reshape(bs, na, no, ny, nx).transpose(0, 1, 3, 4, 2).reshape(
        bs, na * ny * nx, no)
    if logits_p is None:
        return None, z
    x_out = logits_p.reshape(bs, na, no, ny, nx).transpose(0, 1, 3, 4, 2)
    return x_out, z


# --------------------------------------------------------------------------- #
# Full Detect forward (eval mode): returns (cat(z, 1), x_list).
# --------------------------------------------------------------------------- #
def detect_forward(xs, weights, biases, anchors, strides, nc, *,
                   compute_dtype=jnp.float32,
                   logits_dtype=jnp.float32,
                   y_dtype=jnp.float32,
                   emit_logits=True):
    """Equivalent of Detect.forward in eval mode.
    (Training mode of the PyTorch module would simply return x_list.)
    Set emit_logits=False for pure-inference use to skip the raw-head output."""
    x_out, z = [], []
    for i in range(len(xs)):
        xo, zi = detect_layer(xs[i], weights[i], biases[i], anchors[i],
                              strides[i], nc,
                              compute_dtype=compute_dtype,
                              logits_dtype=logits_dtype,
                              y_dtype=y_dtype,
                              emit_logits=emit_logits)
        if xo is not None:
            x_out.append(xo)
        z.append(zi)
    return jnp.concatenate(z, axis=1), (x_out if emit_logits else None)


def detect_reference(xs, weights, biases, anchors, strides, nc):
    """Pure-JAX reference mirroring the PyTorch code (for verification)."""
    na = anchors.shape[1]
    no = nc + 5
    z, x_out = [], []
    for i, x in enumerate(xs):
        bs, cin, ny, nx = x.shape
        w = weights[i].reshape(na * no, cin)
        conv = jnp.einsum('bchw,oc->bohw', x, w) + biases[i][None, :, None, None]
        xi = conv.reshape(bs, na, no, ny, nx).transpose(0, 1, 3, 4, 2)
        x_out.append(xi)
        yv, xv = jnp.meshgrid(jnp.arange(ny), jnp.arange(nx), indexing='ij')
        grid = jnp.stack((xv, yv), 2).astype(jnp.float32)[None, None]    # (1,1,ny,nx,2)
        anchor_grid = (anchors[i] * strides[i]).reshape(1, na, 1, 1, 2)
        y = jax.nn.sigmoid(xi)
        xy = (y[..., 0:2] * 2.0 - 0.5 + grid) * strides[i]
        wh = (y[..., 2:4] * 2) ** 2 * anchor_grid
        y = jnp.concatenate((xy, wh, y[..., 4:]), -1)
        z.append(y.reshape(bs, -1, no))
    return jnp.concatenate(z, 1), x_out


if __name__ == "__main__":
    key = jax.random.PRNGKey(0)

    # Small synthetic Detect config
    nc = 3                       # num classes -> no = 8
    no = nc + 5
    anchors_cfg = ((10, 13, 16, 30, 33, 23), (30, 61, 62, 45, 59, 119))
    nl = len(anchors_cfg)
    na = len(anchors_cfg[0]) // 2
    ch = (4, 8)                  # input channels per level
    spatial = (16, 8)            # feature-map sizes per level
    bs = 2
    strides = jnp.array([8.0, 16.0], dtype=jnp.float32)   # Detect.stride
    anchors = jnp.array(anchors_cfg, dtype=jnp.float32).reshape(nl, na, 2)

    keys = jax.random.split(key, 3 * nl)
    weights, biases, xs = [], [], []
    for i in range(nl):
        weights.append(0.1 * jax.random.normal(keys[3 * i], (na * no, ch[i], 1, 1),
                                               jnp.float32))
        biases.append(0.1 * jax.random.normal(keys[3 * i + 1], (na * no,), jnp.float32))
        xs.append(jax.random.normal(keys[3 * i + 2],
                                    (bs, ch[i], spatial[i], spatial[i]), jnp.float32))

    ref, x_ref_list = detect_reference(xs, weights, biases, anchors, strides, nc)

    # 1) f32 path: strict check against the pure-JAX reference.
    out, x_out = detect_forward(xs, weights, biases, anchors, strides, nc)
    jax.block_until_ready(out)
    assert jnp.allclose(out, ref, atol=1e-4, rtol=1e-4), "decoded output mismatch"
    for a_, b_ in zip(x_out, x_ref_list):
        assert jnp.allclose(a_, b_, atol=1e-4, rtol=1e-4), "raw head output mismatch"

    # 2) Inference-only path: logits output dropped entirely (halves HBM writes).
    z_only, x_none = detect_forward(xs, weights, biases, anchors, strides, nc,
                                    emit_logits=False)
    jax.block_until_ready(z_only)
    assert x_none is None
    assert jnp.allclose(z_only, ref, atol=1e-4, rtol=1e-4), "y-only output mismatch"

    # 3) bf16 matmul inputs + bf16 raw-logits output (bandwidth optimization on
    #    all generations; decode and decoded boxes stay f32): loose check.
    #    Inputs are cast upstream (simulating the preceding conv emitting bf16),
    #    so the wrapper performs no extra cast pass.
    xs_bf16 = [x.astype(jnp.bfloat16) for x in xs]
    out_bf, x_out_bf = detect_forward(xs_bf16, weights, biases, anchors, strides, nc,
                                      compute_dtype=jnp.bfloat16,
                                      logits_dtype=jnp.bfloat16)
    jax.block_until_ready(out_bf)
    assert jnp.allclose(out_bf, ref, atol=1e-1, rtol=1e-1), "bf16 decoded output mismatch"
    for a_, b_ in zip(x_out_bf, x_ref_list):
        assert jnp.allclose(a_.astype(jnp.float32), b_, atol=1e-1, rtol=1e-1), \
            "bf16 raw head output mismatch"

    print("KERNEL_OK")
</pallas_src>

<mosaic_0001>
module attributes {stable_mosaic.version = 11 : i64} {
  func.func @kernel(%arg0: i32, %arg1: i32, %arg2: i32, %arg3: memref<1x4x256xf32, #tpu.memory_space<vmem>>, %arg4: memref<24x4xf32, #tpu.memory_space<vmem>>, %arg5: memref<2x256xf32, #tpu.memory_space<vmem>>, %arg6: memref<24x8xf32, #tpu.memory_space<vmem>>, %arg7: memref<1x24x256xf32, #tpu.memory_space<vmem>>, %arg8: memref<1x24x256xf32, #tpu.memory_space<vmem>>) attributes {dimension_semantics = [#tpu.dimension_semantics<parallel>, #tpu.dimension_semantics<parallel>, #tpu.dimension_semantics<parallel>], iteration_bounds = array<i64: 2, 1, 1>, scalar_prefetch = 0 : i64, scratch_operands = 0 : i64, tpu.core_type = #tpu.core_type<tc>, window_params = [{transform_indices = @transform_0, window_bounds = array<i64: 1, 4, 256>}, {transform_indices = @transform_1, window_bounds = array<i64: 24, 4>}, {transform_indices = @transform_2, window_bounds = array<i64: 2, 256>}, {transform_indices = @transform_3, window_bounds = array<i64: 24, 8>}, {transform_indices = @transform_4, window_bounds = array<i64: 1, 24, 256>}, {transform_indices = @transform_5, window_bounds = array<i64: 1, 24, 256>}]} {
    %c0 = arith.constant 0 : index
    %c0_0 = arith.constant 0 : index
    %0 = vector.load %arg6[%c0, %c0_0] : memref<24x8xf32, #tpu.memory_space<vmem>>, vector<24x8xf32>
    %1 = vector.extract_strided_slice %0 {offsets = [0, 0], sizes = [24, 1], strides = [1, 1]} : vector<24x8xf32> to vector<24x1xf32>
    %2 = vector.extract_strided_slice %0 {offsets = [0, 1], sizes = [24, 1], strides = [1, 1]} : vector<24x8xf32> to vector<24x1xf32>
    %3 = vector.extract_strided_slice %0 {offsets = [0, 2], sizes = [24, 1], strides = [1, 1]} : vector<24x8xf32> to vector<24x1xf32>
    %4 = vector.extract_strided_slice %0 {offsets = [0, 3], sizes = [24, 1], strides = [1, 1]} : vector<24x8xf32> to vector<24x1xf32>
    %5 = vector.extract_strided_slice %0 {offsets = [0, 4], sizes = [24, 1], strides = [1, 1]} : vector<24x8xf32> to vector<24x1xf32>
    %6 = vector.extract_strided_slice %0 {offsets = [0, 5], sizes = [24, 1], strides = [1, 1]} : vector<24x8xf32> to vector<24x1xf32>
    %7 = vector.extract_strided_slice %0 {offsets = [0, 6], sizes = [24, 1], strides = [1, 1]} : vector<24x8xf32> to vector<24x1xf32>
    %c0_1 = arith.constant 0 : index
    %c0_2 = arith.constant 0 : index
    %8 = vector.load %arg4[%c0_1, %c0_2] : memref<24x4xf32, #tpu.memory_space<vmem>>, vector<24x4xf32>
    %c0_3 = arith.constant 0 : index
    %c0_4 = arith.constant 0 : index
    %c0_5 = arith.constant 0 : index
    %9 = vector.load %arg3[%c0_3, %c0_4, %c0_5] : memref<1x4x256xf32, #tpu.memory_space<vmem>>, vector<1x4x256xf32>
    %10 = vector.shape_cast %9 : vector<1x4x256xf32> to vector<4x256xf32>
    %cst = arith.constant dense<0.000000e+00> : vector<24x256xf32>
    %11 = tpu.matmul %8, %10, %cst {dimension_numbers = #tpu.dot_dimension_numbers<[1], [0], [0], [1], [0, 0, 1, 1], [], []>} : vector<24x4xf32>, vector<4x256xf32>, vector<24x256xf32> -> vector<24x256xf32>
    %12 = vector.broadcast %1 : vector<24x1xf32> to vector<24x256xf32>
    %13 = arith.addf %11, %12 : vector<24x256xf32>
    %c0_6 = arith.constant 0 : index
    %c0_7 = arith.constant 0 : index
    %c0_8 = arith.constant 0 : index
    %14 = vector.load %arg7[%c0_6, %c0_7, %c0_8] : memref<1x24x256xf32, #tpu.memory_space<vmem>>, vector<1x24x256xf32>
    %15 = vector.shape_cast %14 : vector<1x24x256xf32> to vector<24x256xf32>
    %16 = vector.shape_cast %13 : vector<24x256xf32> to vector<1x24x256xf32>
    tpu.vector_store %arg7[%c0_6, %c0_7, %c0_8], %16 {strides = array<i32>} : memref<1x24x256xf32, #tpu.memory_space<vmem>>, vector<1x24x256xf32>,
    %cst_9 = arith.constant 5.000000e-01 : f32
    %17 = vector.broadcast %cst_9 : f32 to vector<24x256xf32>
    %18 = arith.mulf %17, %13 : vector<24x256xf32>
    %19 = math.tanh %18 : vector<24x256xf32>
    %cst_10 = arith.constant 5.000000e-01 : f32
    %20 = vector.broadcast %cst_10 : f32 to vector<24x256xf32>
    %21 = arith.mulf %20, %19 : vector<24x256xf32>
    %cst_11 = arith.constant 5.000000e-01 : f32
    %22 = vector.broadcast %cst_11 : f32 to vector<24x256xf32>
    %23 = arith.addf %21, %22 : vector<24x256xf32>
    %c0_12 = arith.constant 0 : index
    %c0_13 = arith.constant 0 : index
    %24 = vector.load %arg5[%c0_12, %c0_13] : memref<2x256xf32, #tpu.memory_space<vmem>>, vector<2x256xf32>
    %25 = vector.extract_strided_slice %24 {offsets = [0, 0], sizes = [1, 256], strides = [1, 1]} : vector<2x256xf32> to vector<1x256xf32>
    %26 = vector.broadcast %5 : vector<24x1xf32> to vector<24x256xf32>
    %27 = vector.broadcast %25 : vector<1x256xf32> to vector<24x256xf32>
    %28 = arith.mulf %26, %27 : vector<24x256xf32>
    %29 = vector.extract_strided_slice %24 {offsets = [1, 0], sizes = [1, 256], strides = [1, 1]} : vector<2x256xf32> to vector<1x256xf32>
    %30 = vector.broadcast %6 : vector<24x1xf32> to vector<24x256xf32>
    %31 = vector.broadcast %29 : vector<1x256xf32> to vector<24x256xf32>
    %32 = arith.mulf %30, %31 : vector<24x256xf32>
    %33 = arith.addf %28, %32 : vector<24x256xf32>
    %34 = vector.broadcast %7 : vector<24x1xf32> to vector<24x256xf32>
    %35 = arith.addf %33, %34 : vector<24x256xf32>
    %cst_14 = arith.constant 5.000000e-01 : f32
    %36 = vector.broadcast %cst_14 : f32 to vector<24x1xf32>
    %37 = arith.cmpf ogt, %4, %36 : vector<24x1xf32>
    %38 = vector.broadcast %3 : vector<24x1xf32> to vector<24x256xf32>
    %39 = arith.mulf %38, %23 : vector<24x256xf32>
    %40 = vector.shape_cast %37 : vector<24x1xi1> to vector<24x1xi1>
    %41 = vector.broadcast %40 : vector<24x1xi1> to vector<24x256xi1>
    %42 = vector.shape_cast %2 : vector<24x1xf32> to vector<24x1xf32>
    %43 = vector.broadcast %42 : vector<24x1xf32> to vector<24x256xf32>
    %44 = arith.select %41, %39, %43 : vector<24x256xi1>, vector<24x256xf32>
    %45 = arith.mulf %44, %23 : vector<24x256xf32>
    %46 = arith.addf %45, %35 : vector<24x256xf32>
    %c0_15 = arith.constant 0 : index
    %c0_16 = arith.constant 0 : index
    %c0_17 = arith.constant 0 : index
    %47 = vector.load %arg8[%c0_15, %c0_16, %c0_17] : memref<1x24x256xf32, #tpu.memory_space<vmem>>, vector<1x24x256xf32>
    %48 = vector.shape_cast %47 : vector<1x24x256xf32> to vector<24x256xf32>
    %49 = vector.shape_cast %46 : vector<24x256xf32> to vector<1x24x256xf32>
    tpu.vector_store %arg8[%c0_15, %c0_16, %c0_17], %49 {strides = array<i32>} : memref<1x24x256xf32, #tpu.memory_space<vmem>>, vector<1x24x256xf32>,
    return
  }
  func.func @transform_0(%arg0: i32, %arg1: i32, %arg2: i32) -> (i32, i32, i32) {
    %c0_i32 = arith.constant 0 : i32
    %c0_i32_0 = arith.constant 0 : i32
    return %arg0, %c0_i32, %arg2 : i32, i32, i32
  }
  func.func @transform_1(%arg0: i32, %arg1: i32, %arg2: i32) -> (i32, i32) {
    %c0_i32 = arith.constant 0 : i32
    %c0_i32_0 = arith.constant 0 : i32
    return %arg1, %c0_i32 : i32, i32
  }
  func.func @transform_2(%arg0: i32, %arg1: i32, %arg2: i32) -> (i32, i32) {
    %c0_i32 = arith.constant 0 : i32
    %c0_i32_0 = arith.constant 0 : i32
    return %c0_i32, %arg2 : i32, i32
  }
  func.func @transform_3(%arg0: i32, %arg1: i32, %arg2: i32) -> (i32, i32) {
    %c0_i32 = arith.constant 0 : i32
    %c0_i32_0 = arith.constant 0 : i32
    return %arg1, %c0_i32 : i32, i32
  }
  func.func @transform_4(%arg0: i32, %arg1: i32, %arg2: i32) -> (i32, i32, i32) {
    %c0_i32 = arith.constant 0 : i32
    return %arg0, %arg1, %arg2 : i32, i32, i32
  }
  func.func @transform_5(%arg0: i32, %arg1: i32, %arg2: i32) -> (i32, i32, i32) {
    %c0_i32 = arith.constant 0 : i32
    return %arg0, %arg1, %arg2 : i32, i32, i32
  }
}

</mosaic_0001>

<bundles_post_ra>
// kernel: tpu_custom_call.1
= control target key start
LH: loop header
LB: loop body
LE: loop exit
PB: predicated region body
PF: predicated region fallthrough
CT: control target
= control target key end

     0   :  { %11 = vsyncpa [#allocation3], 0  ;;  %s1433_s0 = inlined_call_operand.vmem [shape: f32[2,4,256], index: 0, kind: input, shape index: {}]   ;;  %s1434_s1 = inlined_call_operand.vmem [shape: f32[24,4], index: 1, kind: input, shape index: {}]   ;;  %s1435_s2 = inlined_call_operand.vmem [shape: f32[2,256], index: 2, kind: input, shape index: {}]   ;;  %s1436_s3 = inlined_call_operand.vmem [shape: f32[24,8], index: 3, kind: input, shape index: {}]   ;;  %s1437_s4 = inlined_call_operand.hbm [shape: f32[2,24,256], index: 4, kind: output, shape index: {0}]   ;;  %s1438_s5 = inlined_call_operand.hbm [shape: f32[2,24,256], index: 5, kind: output, shape index: {1}]  }
   0x1   :  { %13 = vsyncpa [#allocation3 + $0x1], 0 }
   0x2   :  { %14 = vsyncpa [#allocation5], 0 }
   0x3   :  { %16 = vsyncpa [#allocation5 + $0x1], 0  ;;  %s1157_s18 = smov 0   ;;  %s1159_s19 = smov 0  }
   0x4   :  { %s1161_s20 = smov 0   ;;  %s1163_s21 = smov 0  }
   0x5   :  { %s1165_s22 = smov 0   ;;  %s1167_s23 = smov 0  }
   0x6 LB: > { %s880_s24 = sadd.s32 4294967295, %s1113_s23   ;;  %s881_s25 = sadd.s32 4294967294, %s1113_s23   ;;  %s1113_s23 = sphi %s1167_s23, %s22_s23   ;;  %s1109_s22 = sphi %s1165_s22, %s1445_s22   ;;  %s1105_s21 = sphi %s1163_s21, %s1444_s21   ;;  %s1101_s20 = sphi %s1161_s20, %s1443_s20   ;;  %s1097_s19 = sphi %s1159_s19, %s1442_s19   ;;  %s1093_s18 = sphi %s1157_s18, %s1441_s18  }
   0x7   : > { %s41_s26 = sadd.s32 1, %s1109_s22  ;;  %s158_s27 = sadd.s32 1, %s1101_s20 }
   0x8   : > { %p43_p0 = scmp.ge.s32.totalorder %s41_s26, 2  ;;  %p168_p1 = scmp.ne.s32.totalorder %s1101_s20, %s1097_s19 }
   0x9   : > { %p169_p2 = scmp.eq.s32.totalorder %s880_s24, 1  ;;  %p174_p3 = scmp.ne.s32.totalorder %s1097_s19, %s1093_s18 }
   0xa   : > { %s1447_s26 = smov (%p43_p0, %s41_s26), 0  ;;  %p175_p5 = scmp.eq.s32.totalorder %s881_s25, 1 }
   0xb   : > { %p1197_p4 = por %p169_p2, %p168_p1  ;;  %s151_s29 = ssub.s32 %s1109_s22, %s1447_s26 }
   0xc   : > { %p887_p6 = scmp.ge.s32.totalorder %s1113_s23, 1  ;;  %p156_p7 = scmp.eq.s32.totalorder %s151_s29, 0 }
   0xd   : > { %p1204_p8 = por %p175_p5, %p174_p3  ;;  %p263_p9 = scmp.lt.s32.totalorder %s1113_s23, 3 }
   0xe   : > { %s1210_s6 = scalar_select %p156_p7, %s1101_s20, %s158_s27  }
   0xf   : > { %p264_p10 = pnand %p887_p6, %p263_p9 }
  0x10   : > { %p316_p11 = scmp.lt.s32.totalorder (!%p264_p10), %s1105_s21, 1  ;;  %v1115_v0 = vmov (!%p264_p10), 0.0   ;;  %v1216_v1 = vld [vmem:[%s1436_s3 + $0x10] sm:$0xff] (!%p264_p10)  ;;  %v1116_v2 = vmov (!%p264_p10), 0   ;;  %v1222_v3 = vld [vmem:[%s1436_s3] sm:$0xff] (!%p264_p10)  ;;  %v348_v4 = vld [vmem:[%s1436_s3 + $0x8] sm:$0xff] (!%p264_p10)  ;;  %v513_v29 = vlaneseq (!%p264_p10) }
  0x11   : > { %267 = sbr.rel (%p264_p10) target bundleno = 302 (0x12e), region = 36  ;;  %450 = vmatprep.mubr.f32.mxu0 (!%p264_p10), %v1115_v0  ;;  %456 = vmatprep.mubr.f32.mxu1 (!%p264_p10), %v1115_v0  ;;  %vm381_vm0 = vcmask (!%p264_p10), 1043456   ;;  %v1117_v7 = vmov (!%p264_p10), 4   ;;  %v350_v8 = vld [vmem:[%s1434_s1] sm:$0xff] (!%p264_p10)  ;;  %vm371_vm1 = vcmask (!%p264_p10), 31744   ;;  %v351_v9 = vld [vmem:[%s1434_s1 + $0x8] sm:$0xff] (!%p264_p10) }
  0x12   : > { %976 = vset.pattern.permute.xlu1 (!%p264_p10), %v1116_v2  ;;  %975 = vset.pattern.permute.xlu0 (!%p264_p10), %v1116_v2  ;;  %v352_v10 = vld [vmem:[%s1434_s1 + $0x10] sm:$0xff] (!%p264_p10)  ;;  %v1118_v11 = vmov (!%p264_p10), 5   ;;  %v1119_v12 = vmov (!%p264_p10), 2   ;;  %vm598_vm2 = vcmp.gt.f32.partialorder (!%p264_p10), %v348_v4, 0.5  ;;  %v1120_v14 = vmov (!%p264_p10), 3   ;;  %s903_s15 = smul.u32 (!%p264_p10), 768, %s1105_s21 }
  0x13   : > { %366 = vperm.xlu1 (!%p264_p10), %976, %v1216_v1   ;;  %356 = vperm.xlu0 (!%p264_p10), %975, %v1222_v3   ;;  %v619_v13 = vsel (!%p264_p10), %vm598_vm2, 1, %v1116_v2  ;;  %vm597_vm3 = vcmp.gt.f32.partialorder (!%p264_p10), %v1222_v3, 0.5  ;;  %vm599_vm4 = vcmp.gt.f32.partialorder (!%p264_p10), %v1216_v1, 0.5  ;;  %v1121_v16 = vmov (!%p264_p10), 1   ;;  %v499_v33 = vld [vmem:[%s1435_s2] sm:$0xf] (!%p264_p10) }
  0x14   : > { %v618_v15 = vsel (!%p264_p10), %vm597_vm3, 1, %v1116_v2  ;;  %v620_v17 = vsel (!%p264_p10), %vm599_vm4, 1, %v1116_v2  ;;  %v1122_v18 = vmov (!%p264_p10), 6   ;;  %v514_v32 = vshrl.u32 (!%p264_p10), %v513_v29, 7  ;;  %s1303_s24 = scalar_lea.hbm (!%p264_p10), %s1437_s4, %s903_s15  ;;  %s1123_s29 = smov (!%p264_p10), [#allocation2]  }
  0x15   : > { %s1007_s7 = sshll.u32 (!%p264_p10), %s1123_s29, 4  ;;  %s1008_s7 = int_to_ptr.vmem [resolvable:$false] %s1007_s7 }
  0x16   : > { %v515_v34 = vsub.s32 (!%p264_p10), 0, %v514_v32  ;;  %v519_v37 = vsub.s32 (!%p264_p10), 2, %v514_v32  ;;  %v551_v38 = vsub.s32 (!%p264_p10), 1, %v514_v32  ;;  %v555_v41 = vsub.s32 (!%p264_p10), 3, %v514_v32  ;;  %s1009_s8 = scalar_lea.vmem (!%p264_p10), %s1008_s7, 1536 }
  0x17   : > { %977 = vset.pattern.permute.xlu1 (!%p264_p10), %v1117_v7  ;;  %361 = vperm.xlu0 (!%p264_p10), %975, %v348_v4  }
  0x18   : > { %s317_s9 = scalar_select %p316_p11, %s1105_s21, 1  ;;  %501 = vperm.xlu1 %977, %v1222_v3   ;;  %v516_v48 = vrot.slane %v499_v33, %v515_v34  ;;  %v520_v51 = vrot.slane %v499_v33, %v519_v37  ;;  %v552_v52 = vrot.slane %v499_v33, %v551_v38  ;;  %v556_v56 = vrot.slane %v499_v33, %v555_v41 }
  0x1a   : > { %s899_s12 = sshll.u32 %s317_s9, 3  ;;  %s1272_s9 = sand.u32 1, %s1097_s19   ;;  %v526_v62 = vrot.slane %v516_v48, %v515_v34 }
  0x1b   : > { %s323_s17 = scalar_lea.vmem %s1433_s0, %s899_s12  ;;  %978 = vset.pattern.permute.xlu0 %v1117_v7  ;;  %s902_s10 = smul.u32 48, %s1272_s9 }
  0x1c   : > { %v353_v5 = vld [vmem:[%s323_s17] sm:$0xff]  ;;  %509 = vperm.xlu1 %977, %v1216_v1   ;;  %505 = vperm.xlu0 %978, %v348_v4   ;;  %s670_s25 = scalar_lea.sflag [#allocation3], %s1272_s9 }
  0x1d   : > { %v370_v6 = vcombine.high %v353_v5, %v353_v5  ;;  %s1284_s13 = scalar_lea.vmem [#allocation2], %s902_s10 }
  0x1e   : > { %s693_s14 = sshll.u32 %s1284_s13, 4  ;;  %s1292_s14 = int_to_ptr.vmem [resolvable:$true] %s693_s14 }
  0x1f   : > { %890 = vmatprep.subr.msk.mxu0 %vm381_vm0, %v370_v6  ;;  %900 = vmatprep.subr.msk.mxu1 %vm381_vm0, %v370_v6  ;;  %s1003_s27 = scalar_lea.vmem %s1292_s14, 768  ;;  %p1010_p1 = scmp.lt.s32.totalorder %s1292_s14, %s1008_s7 }
  0x20   : > { %891 = vmatpush1.msk.msra.mxu0 %vm381_vm0, %v353_v5  ;;  %901 = vmatpush1.msk.msra.mxu1 %vm381_vm0, %v353_v5  ;;  %p1004_p12 = scmp.ne.s32.totalorder %s1292_s14, %s1003_s27  ;;  %p1011_p2 = scmp.lt.s32.totalorder %s1009_s8, %s1003_s27 }
  0x21   : > { %892 = vmatmul.mubr.msk.f32.vlgmr.msra.gmra.mrb[0].mxu0 %vm371_vm1, %v350_v8  ;;  %893 = vmatmul.mubr.msk.f32.vlgmr.msra.gmra.mrb[0].mxu1 %vm371_vm1, %v351_v9 }
  0x22   : > { %462 = vmatprep.mubr.f32.mxu1 %v1115_v0  ;;  %979 = vset.pattern.permute.xlu1 %v1118_v11  ;;  %v530_v0 = vrot.slane %v520_v51, %v515_v34  ;;  %p1005_p13 = pnand %p1004_p12, %p1197_p4  ;;  %p1012_p3 = por %p1011_p2, %p1010_p1 }
  0x23   : > { %538 = vperm.xlu1 %979, %v1222_v3   ;;  %980 = vset.pattern.permute.xlu0 %v1118_v11 }
  0x24   : > { %542 = vperm.xlu0 %980, %v348_v4   ;;  %p1006_p0 = pneg %p1005_p13 }
  0x25   : > { %894 = vmatmul.mubr.msk.f32.gmra.mrb[2].mxu1 %vm371_vm1, %v352_v10 }
  0x26   : > { %p1013_p5 = pnand %p1012_p3, %p1006_p0 }
  0x27   : > { %546 = vperm.xlu1 %979, %v1216_v1  }
  0x28   : > { %982 = vset.pattern.permute.xlu0 %v1119_v12 }
  0x29   : > { %605 = vperm.xlu0 %982, %v348_v4  }
  0x2b   : > { %981 = vset.pattern.permute.xlu1 %v1119_v12 }
  0x2c   : > { %601 = vperm.xlu1 %981, %v1222_v3  }
  0x2d   : > { %984 = vset.pattern.permute.xlu0 %v1120_v14 }
  0x2e   : > { %625 = vperm.xlu0 %984, %v619_v13  }
  0x30   : > { %609 = vperm.xlu1 %981, %v1216_v1  }
  0x32   : > { %986 = vset.pattern.permute.xlu0 %v1121_v16 }
  0x33   : > { %638 = vperm.xlu0 %986, %v348_v4  }
  0x34   : > { %983 = vset.pattern.permute.xlu1 %v1120_v14 }
  0x35   : > { %622 = vperm.xlu1 %983, %v618_v15  }
  0x37   : > { %988 = vset.pattern.permute.xlu0 %v1122_v18 }
  0x38   : > { %584 = vperm.xlu0 %988, %v348_v4  }
  0x39   : > { %628 = vperm.xlu1 %983, %v620_v17  }
  0x3c   : > { %989 = vset.pattern.permute.xlu0 %v1121_v16 }
  0x3d   : > { %985 = vset.pattern.permute.xlu1 %v1121_v16 }
  0x3e   : > { %634 = vperm.xlu1 %985, %v1222_v3  }
  0x42   : > { %642 = vperm.xlu1 %985, %v1216_v1  }
  0x46   : > { %987 = vset.pattern.permute.xlu1 %v1122_v18 }
  0x47   : > { %580 = vperm.xlu1 %987, %v1222_v3   ;;  %v566_v3 = vrot.slane %v556_v56, %v551_v38 }
  0x4b   : > { %588 = vperm.xlu1 %987, %v1216_v1   ;;  %v562_v1 = vrot.slane %v552_v52, %v551_v38 }
  0x92   : > { %v367_v19 = vpop.permute.xlu1 %366  ;;  %v357_v24 = vpop.permute.xlu0 %356 }
  0x96   : > { %v362_v26 = vpop.permute.xlu0 %361 }
  0x97   : > { %v1253_v20 = vpop.permute.xlu1 %501 }
  0x9b   : > { %v1255_v21 = vpop.permute.xlu1 %509  ;;  %v1265_v28 = vpop.permute.xlu0 %505 }
  0xa2   : > { %v1257_v22 = vpop.permute.xlu1 %538 }
  0xa3   : > { %v1269_v31 = vpop.permute.xlu0 %542 }
  0xa6   : > { %v1259_v23 = vpop.permute.xlu1 %546 }
  0xa8   : > { %v1280_v36 = vpop.permute.xlu0 %605 }
  0xab   : > { %v1261_v25 = vpop.permute.xlu1 %601 }
  0xad   : > { %v1296_v60 = vpop.permute.xlu0 %625 }
  0xaf   : > { %v1263_v27 = vpop.permute.xlu1 %609 }
  0xb4   : > { %v1267_v30 = vpop.permute.xlu1 %622 }
  0xb8   : > { %v1278_v35 = vpop.permute.xlu1 %628 }
  0xbd   : > { %v1294_v59 = vpop.permute.xlu1 %634 }
  0xf4   : > { %v452_v39 = vpop.f32.mrb[0].mxu0  ;;  %v458_v40 = vpop.f32.mrb[0].mxu1 }
  0xf5   : > { %v453_v42 = vadd.f32 %v452_v39, %v357_v24  ;;  %v459_v43 = vadd.f32 %v458_v40, %v362_v26  ;;  %v454_v44 = vpop.f32.mrb[1].mxu0  ;;  %v460_v45 = vpop.f32.mrb[1].mxu1 }
  0xf6   : > { %v455_v46 = vadd.f32 %v454_v44, %v357_v24  ;;  %v461_v47 = vadd.f32 %v460_v45, %v362_v26 }
  0xf7   : > { %469 = vst [vmem:[%s1284_s13] sm:$0xff] %v453_v42  ;;  %v475_v49 = vmul.f32 0.5, %v453_v42  ;;  %471 = vst [vmem:[%s1284_s13 + $0x10] sm:$0xff] %v459_v43  ;;  %v477_v50 = vmul.f32 0.5, %v459_v43 }
  0xf8   : > { %470 = vst [vmem:[%s1284_s13 + $0x8] sm:$0xff] %v455_v46  ;;  %v476_v53 = vmul.f32 0.5, %v455_v46  ;;  %472 = vst [vmem:[%s1284_s13 + $0x18] sm:$0xff] %v461_v47  ;;  %v478_v54 = vmul.f32 0.5, %v461_v47  ;;  %v464_v55 = vpop.f32.mrb[2].mxu1 }
  0xf9   : > { %991 = vtanh.f32 %v475_v49  ;;  %v465_v57 = vadd.f32 %v464_v55, %v367_v19  ;;  %v466_v58 = vpop.f32.mrb[3].mxu1 }
  0xfa   : > { %993 = vtanh.f32 %v477_v50  ;;  %v467_v61 = vadd.f32 %v466_v58, %v367_v19 }
  0xfb   : > { %995 = vtanh.f32 %v476_v53  ;;  %473 = vst [vmem:[%s1284_s13 + $0x20] sm:$0xff] %v465_v57  ;;  %v479_v63 = vmul.f32 0.5, %v465_v57 }
  0xfc   : > { %997 = vtanh.f32 %v478_v54  ;;  %474 = vst [vmem:[%s1284_s13 + $0x28] sm:$0xff] %v467_v61  ;;  %v480_v2 = vmul.f32 0.5, %v467_v61 }
  0xfd   : > { %999 = vtanh.f32 %v479_v63 }
  0xfe   : > { %1016 = shalt.err (!%p1013_p5)
}
  0xff   : > { %s1017_s11 = scalar_lea.hbm %s1303_s24, 768  ;;  %s1021_s16 = scalar_lea.hbm %s1437_s4, 1536 }
 0x100   : > { %p1018_p6 = scmp.ne.s32.totalorder %s1303_s24, %s1017_s11  ;;  %p1022_p10 = scmp.lt.u32.totalorder %s1303_s24, %s1437_s4 }
 0x101   : > { %p1023_p11 = scmp.lt.u32.totalorder %s1021_s16, %s1017_s11  ;;  %p1025_p13 = scmp.lt.u32.totalorder %s1017_s11, %s1303_s24 }
 0x102   : > { %p1019_p7 = pnand %p1018_p6, %p1197_p4 }
 0x103   : > { %p1024_p12 = por %p1023_p11, %p1022_p10 }
 0x104   : > { %p1020_p9 = pneg %p1019_p7 }
 0x105   : > { %p1026_p0 = por %p1025_p13, %p1024_p12 }
 0x107   : > { %p1027_p1 = pnand %p1026_p0, %p1020_p9 }
 0x109   : > { %1030 = shalt.err (!%p1027_p1)
}
 0x10a   : > { %s1124_s27 = smov 256   ;;  %s1125_s7 = smov 16   ;;  %1001 = vtanh.f32 %v480_v2  ;;  %v531_v4 = vmul.f32 %v526_v62, %v1253_v20  ;;  %v532_v5 = vmul.f32 %v530_v0, %v1253_v20  ;;  %v567_v6 = vmul.f32 %v562_v1, %v1257_v22  ;;  %v1337_v7 = vpop.permute.xlu1 %642  ;;  %v639_v9 = vpop.permute.xlu0 %638 }
 0x10b   : > { %905 = dma.vmem_to_hbm [thread:$0]  (%p1197_p4), %s1292_s14, 768, %s1303_s24, %s670_s25, %s1124_s27, %s1124_s27, %s1125_s7   ;;  %v533_v8 = vmul.f32 %v526_v62, %v1265_v28  ;;  %v568_v10 = vmul.f32 %v566_v3, %v1257_v22  ;;  %v534_v11 = vmul.f32 %v530_v0, %v1265_v28  ;;  %v569_v12 = vmul.f32 %v562_v1, %v1269_v31  ;;  %v992_v18 = vpop.eup %991 }
 0x10c   : > { %v570_v13 = vmul.f32 %v566_v3, %v1269_v31  ;;  %v535_v14 = vmul.f32 %v526_v62, %v1255_v21  ;;  %v536_v15 = vmul.f32 %v530_v0, %v1255_v21  ;;  %v571_v16 = vmul.f32 %v562_v1, %v1259_v23  ;;  %v994_v19 = vpop.eup %993  ;;  %s314_s14 = scalar_lea.vmem [#allocation4], %s902_s10  ;;  %s1380_s8 = scalar_lea.hbm %s1438_s5, %s903_s15 }
 0x10d   : > { %v572_v17 = vmul.f32 %v566_v3, %v1259_v23  ;;  %v573_v20 = vadd.f32 %v567_v6, %v531_v4  ;;  %v487_v24 = vmul.f32 0.5, %v992_v18  ;;  %v996_v26 = vpop.eup %995  ;;  %v574_v22 = vadd.f32 %v568_v10, %v532_v5  ;;  %s714_s24 = sshll.u32 %s314_s14, 4  ;;  %s675_s11 = scalar_lea.sflag [#allocation5], %s1272_s9  ;;  %s1382_s24 = int_to_ptr.vmem [resolvable:$true] %s714_s24 }
 0x10e   : > { %v489_v29 = vmul.f32 0.5, %v994_v19  ;;  %v575_v28 = vadd.f32 %v569_v12, %v533_v8  ;;  %v576_v32 = vadd.f32 %v570_v13, %v534_v11  ;;  %v998_v33 = vpop.eup %997  ;;  %v581_v34 = vpop.permute.xlu1 %580  ;;  %v577_v31 = vadd.f32 %v571_v16, %v535_v14  ;;  %s1031_s12 = scalar_lea.vmem %s1382_s24, 768  ;;  %s1126_s13 = smov [#allocation4]  }
 0x10f   : > { %v578_v37 = vadd.f32 %v572_v17, %v536_v15  ;;  %v493_v38 = vadd.f32 0.5, %v487_v24  ;;  %v488_v39 = vmul.f32 0.5, %v996_v26  ;;  %v585_v21 = vpop.permute.xlu0 %584  ;;  %v1000_v40 = vpop.eup %999  ;;  %vm630_vm5 = vcmp.eq.s32.totalorder %v1267_v30, 1  ;;  %p1032_p2 = scmp.ne.s32.totalorder %s1382_s24, %s1031_s12  ;;  %s1035_s21 = sshll.u32 %s1126_s13, 4  ;;  %s1036_s21 = int_to_ptr.vmem [resolvable:$false] %s1035_s21 }
 0x110   : > { %vm631_vm6 = vcmp.eq.s32.totalorder %v1296_v60, 1  ;;  %v490_v23 = vmul.f32 0.5, %v998_v33  ;;  %v495_v41 = vadd.f32 0.5, %v489_v29  ;;  %vm632_vm7 = vcmp.eq.s32.totalorder %v1278_v35, 1  ;;  %s1037_s16 = scalar_lea.vmem %s1036_s21, 1536  ;;  %p1038_p6 = scmp.lt.s32.totalorder %s1382_s24, %s1036_s21 }
 0x111   : > { %v612_v43 = vmul.f32 %v1261_v25, %v493_v38  ;;  %v494_v44 = vadd.f32 0.5, %v488_v39  ;;  %v491_v45 = vmul.f32 0.5, %v1000_v40  ;;  %v593_v49 = vadd.f32 %v585_v21, %v575_v28  ;;  %p1033_p3 = pnand %p1032_p2, %p1197_p4  ;;  %p1039_p7 = scmp.lt.s32.totalorder %s1037_s16, %s1031_s12 }
 0x112   : > { %v496_v46 = vadd.f32 0.5, %v490_v23  ;;  %v614_v47 = vmul.f32 %v1280_v36, %v495_v41  ;;  %v591_v50 = vadd.f32 %v581_v34, %v573_v20  ;;  %v592_v58 = vadd.f32 %v581_v34, %v574_v22  ;;  %v589_v61 = vpop.permute.xlu1 %588 }
 0x113   : > { %v645_v51 = vsel %vm630_vm5, %v612_v43, %v1294_v59  ;;  %v613_v52 = vmul.f32 %v1261_v25, %v494_v44  ;;  %v497_v53 = vadd.f32 0.5, %v491_v45  ;;  %v594_v5 = vadd.f32 %v585_v21, %v576_v32  ;;  %p1034_p5 = pneg %p1033_p3  ;;  %p1040_p9 = por %p1039_p7, %p1038_p6 }
 0x114   : > { %v1002_v42 = vpop.eup %1001  ;;  %v651_v54 = vmul.f32 %v645_v51, %v493_v38  ;;  %v615_v55 = vmul.f32 %v1280_v36, %v496_v46  ;;  %v647_v56 = vsel %vm631_vm6, %v614_v47, %v639_v9  ;;  %v595_v30 = vadd.f32 %v589_v61, %v577_v31 }
 0x115   : > { %v492_v48 = vmul.f32 0.5, %v1002_v42  ;;  %v646_v62 = vsel %vm630_vm5, %v613_v52, %v1294_v59  ;;  %v653_v63 = vmul.f32 %v647_v56, %v495_v41  ;;  %v616_v0 = vmul.f32 %v1263_v27, %v497_v53  ;;  %p1041_p10 = pnand %p1040_p9, %p1034_p5 }
 0x116   : > { %v657_v1 = vadd.f32 %v651_v54, %v591_v50  ;;  %v652_v25 = vmul.f32 %v646_v62, %v494_v44  ;;  %v648_v2 = vsel %vm631_vm6, %v615_v55, %v639_v9 }
 0x117   : > { %v498_v57 = vadd.f32 0.5, %v492_v48  ;;  %v654_v3 = vmul.f32 %v648_v2, %v496_v46  ;;  %v649_v4 = vsel %vm632_vm7, %v616_v0, %v1337_v7  ;;  %v659_v6 = vadd.f32 %v653_v63, %v593_v49 }
 0x118   : > { %663 = vst [vmem:[%s314_s14] sm:$0xff] %v657_v1  ;;  %v658_v59 = vadd.f32 %v652_v25, %v592_v58  ;;  %v655_v8 = vmul.f32 %v649_v4, %v497_v53 }
 0x119   : > { %v617_v36 = vmul.f32 %v1263_v27, %v498_v57  ;;  %v596_v27 = vadd.f32 %v589_v61, %v578_v37  ;;  %v660_v10 = vadd.f32 %v654_v3, %v594_v5  ;;  %665 = vst [vmem:[%s314_s14 + $0x10] sm:$0xff] %v659_v6 }
 0x11a   : > { %664 = vst [vmem:[%s314_s14 + $0x8] sm:$0xff] %v658_v59  ;;  %v661_v11 = vadd.f32 %v655_v8, %v595_v30 }
 0x11b   : > { %v650_v60 = vsel %vm632_vm7, %v617_v36, %v1337_v7  ;;  %666 = vst [vmem:[%s314_s14 + $0x18] sm:$0xff] %v660_v10 }
 0x11c   : > { %v656_v9 = vmul.f32 %v650_v60, %v498_v57  ;;  %667 = vst [vmem:[%s314_s14 + $0x20] sm:$0xff] %v661_v11 }
 0x11e   : > { %v662_v12 = vadd.f32 %v656_v9, %v596_v27 }
 0x120   : > { %668 = vst [vmem:[%s314_s14 + $0x28] sm:$0xff] %v662_v12 }
 0x121   : > { %1044 = shalt.err (!%p1041_p10)
}
 0x122   : > { %s1045_s15 = scalar_lea.hbm %s1380_s8, 768  ;;  %s1049_s14 = scalar_lea.hbm %s1438_s5, 1536 }
 0x123   : > { %p1046_p11 = scmp.ne.s32.totalorder %s1380_s8, %s1045_s15  ;;  %p1050_p0 = scmp.lt.u32.totalorder %s1380_s8, %s1438_s5 }
 0x124   : > { %p1051_p1 = scmp.lt.u32.totalorder %s1049_s14, %s1045_s15  ;;  %p1053_p3 = scmp.lt.u32.totalorder %s1045_s15, %s1380_s8 }
 0x125   : > { %p1047_p12 = pnand %p1046_p11, %p1197_p4 }
 0x126   : > { %p1052_p2 = por %p1051_p1, %p1050_p0 }
 0x127   : > { %p1048_p13 = pneg %p1047_p12 }
 0x128   : > { %p1054_p5 = por %p1053_p3, %p1052_p2 }
 0x12a   : > { %p1055_p6 = pnand %p1054_p5, %p1048_p13 }
 0x12c   : > { %1058 = shalt.err (!%p1055_p6)
}
 0x12d   : > { %906 = dma.vmem_to_hbm [thread:$0]  (%p1197_p4), %s1382_s24, 768, %s1380_s8, %s675_s11, %s1124_s27, %s1124_s27, %s1125_s7  }
 0x12e PF: > { %p916_p7 = scmp.ge.s32.totalorder %s1113_s23, 2  ;;  %s729_s12 = sand.u32 1, %s1093_s18  }
 0x12f   : > { %s730_s13 = scalar_lea.sflag [#allocation3], %s729_s12 }
 0x130   : > { %p910_p9 = pnand %p916_p7, %p1204_p8 }
 0x132   : > { %1084 = dma.done.wait (!%p910_p9), %s730_s13, 768  }
 0x133   : > { %1086 = vsyncadd (!%p910_p9), %s730_s13, 4294966528  ;;  %s739_s28 = scalar_lea.sflag [#allocation5], %s729_s12 }
 0x134   : > { %1088 = dma.done.wait (!%p910_p9), %s739_s28, 768  }
 0x135   : > { %1090 = vsyncadd (!%p910_p9), %s739_s28, 4294966528  ;;  %s22_s23 = sadd.s32 1, %s1113_s23   ;;  %s1441_s18 = smov %s1097_s19 }
 0x136   : > { %p19_p10 = scmp.ge.s32.totalorder %s22_s23, 4   ;;  %s1442_s19 = smov %s1101_s20 }
 0x137   : > { %s1443_s20 = smov %s1210_s6  ;;  %s1444_s21 = smov %s1109_s22 }
 0x138   : > { %s1445_s22 = smov %s1447_s26  ;;  %21 = sbr.rel (!%p19_p10) target bundleno = 6 (0x6), region = 97 }
 0x13f   :  { %744 = vsyncpa [#allocation3], 1 }
 0x140   :  { %746 = vsyncpa [#allocation3 + $0x1], 1 }
 0x141   :  { %747 = vsyncpa [#allocation5], 1 }
 0x142   :  { %749 = vsyncpa [#allocation5 + $0x1], 1 }

</bundles_post_ra>
